<compile_context>
chip_gen: v6e
topology: v6e:2x2x1
jax: 0.10.0
libtpu: 0.0.40
codegen_flags: <defaults>
</compile_context>

<pallas_src>
import functools

import jax
import jax.numpy as jnp
from jax import lax
from jax.experimental import pallas as pl
from jax.experimental.pallas import tpu as pltpu


def _round_up(n, m):
    return ((n + m - 1) // m) * m


def _pick_time_chunk(T, per_step_bytes, budget_bytes=2 * 1024 * 1024):
    """Largest divisor of T whose per-chunk streaming buffer stays in budget."""
    best = 1
    for tc in range(1, T + 1):
        if T % tc == 0 and tc * per_step_bytes <= budget_bytes:
            best = tc
    return best


def _vmem_limit(bytes_needed):
    # 2x headroom over the estimated working set, clamped to a range that is
    # valid on v5e/v6e (128 MiB physical) and v7x (64 MiB physical).
    return int(min(max(2 * bytes_needed, 32 * 1024 * 1024), 64 * 1024 * 1024))


# --------------------------------------------------------------------------
# Phase 1: input projection (hoisted out of the recurrence).
# --------------------------------------------------------------------------
def _input_proj_kernel(x_ref, w_ref, b_ref, out_ref):
    # (Tc*Bp, F) @ (F, 4Hp) + (1, 4Hp)  ->  (Tc*Bp, 4Hp), f32 accumulation.
    out_ref[...] = (
        jnp.dot(x_ref[...], w_ref[...], preferred_element_type=jnp.float32)
        + b_ref[...]
    )


# --------------------------------------------------------------------------
# Phase 2: serial recurrence.  Only the small h @ W_hh matmul + elementwise
# gate math remain on the per-timestep critical path.
# --------------------------------------------------------------------------
def _lstm_recurrence_kernel(xp_ref, w_hh_ref, h_out_ref, h_scr, c_scr, *,
                            bp, hp, tc):
    @pl.when(pl.program_id(0) == 0)
    def _init():
        h_scr[...] = jnp.zeros_like(h_scr)
        c_scr[...] = jnp.zeros_like(c_scr)

    def step(t, carry):
        h, c = carry                                   # (Bp, Hp) f32 in vregs
        row = pl.multiple_of(t * bp, bp)
        # Pre-projected gates for this step (bias already folded in) plus the
        # hidden-state projection on the MXU (bf16 operands, f32 accumulate).
        gates = xp_ref[pl.ds(row, bp), :] + jnp.dot(
            h.astype(w_hh_ref.dtype), w_hh_ref[...],
            preferred_element_type=jnp.float32)
        # Lane-aligned full-slab gate slices (Hp is a multiple of 128).
        i_g = jax.nn.sigmoid(gates[:, 0 * hp:1 * hp])
        f_g = jax.nn.sigmoid(gates[:, 1 * hp:2 * hp])
        g_g = jnp.tanh(gates[:, 2 * hp:3 * hp])
        o_g = jax.nn.sigmoid(gates[:, 3 * hp:4 * hp])
        c_new = f_g * c + i_g * g_g
        h_new = o_g * jnp.tanh(c_new)
        return h_new, c_new

    h_fin, c_fin = lax.fori_loop(0, tc, step, (h_scr[...], c_scr[...]),
                                 unroll=2)

    # Persist the carry for the next time chunk (one store per chunk, not
    # per time step).
    h_scr[...] = h_fin
    c_scr[...] = c_fin

    @pl.when(pl.program_id(0) == pl.num_programs(0) - 1)
    def _finalize():
        h_out_ref[...] = h_fin


# --------------------------------------------------------------------------
# Wrapper: equivalent of LSTM.forward -> h_n.squeeze(0), shape (B, H).
# --------------------------------------------------------------------------
def lstm_forward(x, w_ih, w_hh, b_ih, b_hh, *, matmul_dtype=jnp.bfloat16):
    """x: (B, T, F) batch_first; weights in PyTorch layout:
       w_ih (4H, F), w_hh (4H, H), b_ih (4H,), b_hh (4H,)."""
    B, T, F = x.shape
    H4 = w_ih.shape[0]
    H = H4 // 4
    Bp = _round_up(B, 8)          # sublane alignment (also pads tiny batches)
    Hp = _round_up(H, 128)        # lane alignment -> each gate a full slab
    gate_w = 4 * Hp
    f32 = jnp.float32

    def pad_gate_cols(w):         # (rows, 4H) -> (rows, 4Hp), gate aligned
        return jnp.concatenate(
            [jnp.pad(w[:, k * H:(k + 1) * H], ((0, 0), (0, Hp - H)))
             for k in range(4)], axis=1)

    # Transposed, gate-slab-aligned weights; padded rows/cols are zero.
    w_ih_t = pad_gate_cols(w_ih.astype(f32).T)                    # (F, 4Hp)
    w_hh_t = pad_gate_cols(w_hh.astype(f32).T)                    # (H, 4Hp)
    w_hh_t = jnp.pad(w_hh_t, ((0, Hp - H), (0, 0)))               # (Hp, 4Hp)
    bias = pad_gate_cols((b_ih + b_hh).astype(f32).reshape(1, H4))  # (1, 4Hp)

    # Time-major, batch-padded input, flattened to 2-D (t-major rows).
    # The transpose is a single XLA op outside the serial recurrence.
    x_tm = jnp.transpose(x.astype(f32), (1, 0, 2))                # (T, B, F)
    x_tm = jnp.pad(x_tm, ((0, 0), (0, Bp - B), (0, 0)))           # (T, Bp, F)
    x2d = x_tm.reshape(T * Bp, F).astype(matmul_dtype)            # (T*Bp, F)

    per_step_bytes = Bp * gate_w * 4            # f32 x_proj rows per time step
    Tc = _pick_time_chunk(T, per_step_bytes)
    n_chunks = T // Tc
    chunk_rows = Tc * Bp

    # ---------------- Phase 1: big parallel projection matmul ----------------
    proj_need = (2 * chunk_rows * gate_w * 4 + 2 * chunk_rows * F * 2
                 + 2 * F * gate_w * 2 + 2 * gate_w * 4)
    x_proj = pl.pallas_call(
        _input_proj_kernel,
        out_shape=jax.ShapeDtypeStruct((T * Bp, gate_w), f32),
        grid=(n_chunks,),
        in_specs=[
            pl.BlockSpec((chunk_rows, F), lambda i: (i, 0)),
            pl.BlockSpec((F, gate_w), lambda i: (0, 0)),
            pl.BlockSpec((1, gate_w), lambda i: (0, 0)),
        ],
        out_specs=pl.BlockSpec((chunk_rows, gate_w), lambda i: (i, 0)),
        compiler_params=pltpu.CompilerParams(
            dimension_semantics=("parallel",),
            vmem_limit_bytes=_vmem_limit(proj_need)),
    )(x2d, w_ih_t.astype(matmul_dtype), bias)

    # ---------------- Phase 2: streamed serial recurrence --------------------
    rec_need = (2 * chunk_rows * gate_w * 4 + 2 * Hp * gate_w * 2
                + 4 * Bp * Hp * 4)
    h_full = pl.pallas_call(
        functools.partial(_lstm_recurrence_kernel, bp=Bp, hp=Hp, tc=Tc),
        out_shape=jax.ShapeDtypeStruct((Bp, Hp), f32),
        grid=(n_chunks,),
        in_specs=[
            pl.BlockSpec((chunk_rows, gate_w), lambda i: (i, 0)),
            pl.BlockSpec((Hp, gate_w), lambda i: (0, 0)),
        ],
        out_specs=pl.BlockSpec((Bp, Hp), lambda i: (0, 0)),
        scratch_shapes=[
            pltpu.VMEM((Bp, Hp), f32),    # h carry across time chunks
            pltpu.VMEM((Bp, Hp), f32),    # c carry across time chunks
        ],
        compiler_params=pltpu.CompilerParams(
            dimension_semantics=("arbitrary",),
            vmem_limit_bytes=_vmem_limit(rec_need)),
    )(x_proj, w_hh_t.astype(matmul_dtype))

    # TODO(synk): for large batches, add a leading "parallel" batch-block grid
    # axis to the recurrence so both v7x TensorCores are used.
    return h_full[:B, :H]


# --------------------------------------------------------------------------
# Pure-JAX reference (mirrors torch.nn.LSTM, single layer, h0 = c0 = 0).
# --------------------------------------------------------------------------
def _lstm_reference(x, w_ih, w_hh, b_ih, b_hh):
    B, T, F = x.shape
    H = w_hh.shape[1]
    bias = b_ih + b_hh

    def step(carry, x_t):
        h, c = carry
        gates = x_t @ w_ih.T + h @ w_hh.T + bias
        i = jax.nn.sigmoid(gates[:, 0 * H:1 * H])
        f = jax.nn.sigmoid(gates[:, 1 * H:2 * H])
        g = jnp.tanh(gates[:, 2 * H:3 * H])
        o = jax.nn.sigmoid(gates[:, 3 * H:4 * H])
        c = f * c + i * g
        h = o * jnp.tanh(c)
        return (h, c), None

    h0 = jnp.zeros((B, H), jnp.float32)
    c0 = jnp.zeros((B, H), jnp.float32)
    (h_n, _), _ = lax.scan(step, (h0, c0), jnp.transpose(x, (1, 0, 2)))
    return h_n


if __name__ == "__main__":
    # Small shapes consistent with the module: batch=2, seq=8,
    # n_features=16, hidden_dim=32.
    B, T, F, H = 2, 8, 16, 32

    key = jax.random.PRNGKey(0)
    kx, k1, k2, k3, k4 = jax.random.split(key, 5)

    # PyTorch-style U(-1/sqrt(H), 1/sqrt(H)) init.
    bound = 1.0 / (H ** 0.5)
    w_ih = jax.random.uniform(k1, (4 * H, F), jnp.float32, -bound, bound)
    w_hh = jax.random.uniform(k2, (4 * H, H), jnp.float32, -bound, bound)
    b_ih = jax.random.uniform(k3, (4 * H,), jnp.float32, -bound, bound)
    b_hh = jax.random.uniform(k4, (4 * H,), jnp.float32, -bound, bound)

    x = jax.random.normal(kx, (B, T, F), jnp.float32)

    h_n = jax.block_until_ready(lstm_forward(x, w_ih, w_hh, b_ih, b_hh))
    h_ref = _lstm_reference(x, w_ih, w_hh, b_ih, b_hh)

    assert h_n.shape == (B, H), h_n.shape
    # bf16 matmul operands with f32 accumulation -> loose-but-tight tolerance.
    max_err = float(jnp.max(jnp.abs(h_n - h_ref)))
    assert jnp.allclose(h_n, h_ref, rtol=2e-2, atol=2e-2), max_err
    print("KERNEL_OK")
</pallas_src>

<mosaic_0001>
module attributes {stable_mosaic.version = 11 : i64} {
  func.func @_input_proj_kernel(%arg0: i32, %arg1: memref<64x16xbf16, #tpu.memory_space<vmem>>, %arg2: memref<16x512xbf16, #tpu.memory_space<vmem>>, %arg3: memref<1x512xf32, #tpu.memory_space<vmem>>, %arg4: memref<64x512xf32, #tpu.memory_space<vmem>>) attributes {dimension_semantics = [#tpu.dimension_semantics<parallel>], iteration_bounds = array<i64: 1>, scalar_prefetch = 0 : i64, scratch_operands = 0 : i64, tpu.core_type = #tpu.core_type<tc>, window_params = [{transform_indices = @transform_0, window_bounds = array<i64: 64, 16>}, {pipeline_mode = #tpu.pipeline_mode<synchronous>, transform_indices = @transform_1, window_bounds = array<i64: 16, 512>}, {pipeline_mode = #tpu.pipeline_mode<synchronous>, transform_indices = @transform_2, window_bounds = array<i64: 1, 512>}, {transform_indices = @transform_3, window_bounds = array<i64: 64, 512>}]} {
    %c0 = arith.constant 0 : index
    %c0_0 = arith.constant 0 : index
    %0 = vector.load %arg1[%c0, %c0_0] : memref<64x16xbf16, #tpu.memory_space<vmem>>, vector<64x16xbf16>
    %c0_1 = arith.constant 0 : index
    %c0_2 = arith.constant 0 : index
    %1 = vector.load %arg2[%c0_1, %c0_2] : memref<16x512xbf16, #tpu.memory_space<vmem>>, vector<16x512xbf16>
    %cst = arith.constant dense<0.000000e+00> : vector<64x512xf32>
    %2 = tpu.matmul %0, %1, %cst {dimension_numbers = #tpu.dot_dimension_numbers<[1], [0], [0], [1], [0, 0, 1, 1], [], []>} : vector<64x16xbf16>, vector<16x512xbf16>, vector<64x512xf32> -> vector<64x512xf32>
    %c0_3 = arith.constant 0 : index
    %c0_4 = arith.constant 0 : index
    %3 = vector.load %arg3[%c0_3, %c0_4] : memref<1x512xf32, #tpu.memory_space<vmem>>, vector<1x512xf32>
    %4 = vector.broadcast %3 : vector<1x512xf32> to vector<64x512xf32>
    %5 = arith.addf %2, %4 : vector<64x512xf32>
    %c0_5 = arith.constant 0 : index
    %c0_6 = arith.constant 0 : index
    %6 = vector.load %arg4[%c0_5, %c0_6] : memref<64x512xf32, #tpu.memory_space<vmem>>, vector<64x512xf32>
    tpu.vector_store %arg4[%c0_5, %c0_6], %5 {strides = array<i32>} : memref<64x512xf32, #tpu.memory_space<vmem>>, vector<64x512xf32>,
    return
  }
  func.func @transform_0(%arg0: i32) -> (i32, i32) {
    %c0_i32 = arith.constant 0 : i32
    %c0_i32_0 = arith.constant 0 : i32
    return %arg0, %c0_i32 : i32, i32
  }
  func.func @transform_1(%arg0: i32) -> (i32, i32) {
    %c0_i32 = arith.constant 0 : i32
    %c0_i32_0 = arith.constant 0 : i32
    %c0_i32_1 = arith.constant 0 : i32
    return %c0_i32, %c0_i32_0 : i32, i32
  }
  func.func @transform_2(%arg0: i32) -> (i32, i32) {
    %c0_i32 = arith.constant 0 : i32
    %c0_i32_0 = arith.constant 0 : i32
    %c0_i32_1 = arith.constant 0 : i32
    return %c0_i32, %c0_i32_0 : i32, i32
  }
  func.func @transform_3(%arg0: i32) -> (i32, i32) {
    %c0_i32 = arith.constant 0 : i32
    %c0_i32_0 = arith.constant 0 : i32
    return %arg0, %c0_i32 : i32, i32
  }
}

</mosaic_0001>

<bundles_post_ra>
// kernel: tpu_custom_call.1
= control target key start
LH: loop header
LB: loop body
LE: loop exit
PB: predicated region body
PF: predicated region fallthrough
CT: control target
= control target key end

     0   :  { %v349_v2 = vmov 0   ;;  %vm90_vm0 = vcmask 130048   ;;  %s451_s0 = inlined_call_operand.vmem [shape: bf16[64,16], index: 0, kind: input, shape index: {}]   ;;  %s452_s1 = inlined_call_operand.vmem [shape: bf16[16,512], index: 1, kind: input, shape index: {}]   ;;  %s453_s2 = inlined_call_operand.vmem [shape: f32[1,512], index: 2, kind: input, shape index: {}]   ;;  %s454_s3 = inlined_call_operand.hbm [shape: f32[64,512], index: 3, kind: output, shape index: {}]  }
   0x1   :  { %v317_v0 = vld [vmem:[%s452_s1 + $0x4] ss:$16 sps:$4 sm:$0xff]   ;;  %v319_v1 = vld [vmem:[%s452_s1 + $0xc] ss:$16 sps:$4 sm:$0xff]   ;;  %135 = vmatprep.mubr.bf16.mxu0 %v349_v2  ;;  %208 = vmatprep.mubr.bf16.mxu1 %v349_v2  ;;  %v321_v3 = vld [vmem:[%s452_s1] ss:$16 sps:$4 sm:$0xff]  }
   0x2   :  { %117 = vmatprep.subr.bf16.mxu0 %v317_v0  ;;  %v322_v4 = vld [vmem:[%s452_s1 + $0x8] ss:$16 sps:$4 sm:$0xff]   ;;  %190 = vmatprep.subr.bf16.mxu1 %v319_v1  ;;  %v323_v5 = vld [vmem:[%s451_s0] sm:$0xff]  }
   0x3   :  { %118 = vmatpush1.bf16.msra.mxu0 %v321_v3  ;;  %191 = vmatpush1.bf16.msra.mxu1 %v322_v4 }
   0x6   :  { %305 = vmatmul.mubr.msk.bf16.vlgmr.msra.gmra.mxu0 %vm90_vm0, %v323_v5  ;;  %309 = vmatmul.mubr.msk.bf16.vlgmr.msra.gmra.mxu1 %vm90_vm0, %v323_v5 }
   0x7   :  { %8 = vsyncpa [#allocation3], 0  ;;  %145 = vmatprep.mubr.bf16.mxu0 %v349_v2  ;;  %218 = vmatprep.mubr.bf16.mxu1 %v349_v2  ;;  %v324_v6 = vld [vmem:[%s451_s0 + $0x8] sm:$0xff]   ;;  %v325_v7 = vld [vmem:[%s451_s0 + $0x10] sm:$0xff]   ;;  %v30_v9 = vlaneseq }
   0x8   :  { %v326_v8 = vld [vmem:[%s451_s0 + $0x18] sm:$0xff]   ;;  %v28_v13 = vld [vmem:[%s453_s2] sm:$0xf]  ;;  %s350_s0 = smov [#allocation2]  }
   0x9   :  { %v31_v10 = vshrl.u32 %v30_v9, 7  ;;  %s286_s2 = sshll.u32 %s350_s0, 4  ;;  %s287_s2 = int_to_ptr.vmem [resolvable:$true] %s286_s2 }
   0xa   :  { %s327_s29 = scalar_lea.vmem %s287_s2, 4096  ;;  %p332_p1 = scmp.lt.s32.totalorder %s287_s2, %s287_s2 }
   0xb   :  { %v32_v11 = vsub.s32 0, %v31_v10  ;;  %v40_v12 = vsub.s32 2, %v31_v10  ;;  %v36_v14 = vsub.s32 1, %v31_v10  ;;  %v44_v15 = vsub.s32 3, %v31_v10  ;;  %p328_p0 = scmp.ne.s32.totalorder %s287_s2, %s327_s29  ;;  %p333_p2 = scmp.lt.s32.totalorder %s327_s29, %s327_s29 }
   0xd   :  { %v408_v16 = vrot.slane %v28_v13, %v32_v11  ;;  %v410_v17 = vrot.slane %v28_v13, %v40_v12  ;;  %v412_v18 = vrot.slane %v28_v13, %v36_v14  ;;  %v414_v19 = vrot.slane %v28_v13, %v44_v15  ;;  %p334_p3 = por %p333_p2, %p332_p1 }
   0xe   :  { %306 = vmatmul.mubr.msk.bf16.gmra.mxu0 %vm90_vm0, %v324_v6  ;;  %310 = vmatmul.mubr.msk.bf16.gmra.mxu1 %vm90_vm0, %v324_v6 }
   0xf   :  { %155 = vmatprep.mubr.bf16.mxu0 %v349_v2  ;;  %228 = vmatprep.mubr.bf16.mxu1 %v349_v2  ;;  %p335_p4 = pnand %p334_p3, %p328_p0 }
  0x16   :  { %307 = vmatmul.mubr.msk.bf16.gmra.mxu0 %vm90_vm0, %v325_v7  ;;  %311 = vmatmul.mubr.msk.bf16.gmra.mxu1 %vm90_vm0, %v325_v7 }
  0x17   :  { %165 = vmatprep.mubr.bf16.mxu0 %v349_v2  ;;  %238 = vmatprep.mubr.bf16.mxu1 %v349_v2 }
  0x1e   :  { %308 = vmatmul.mubr.msk.bf16.gmra.mxu0 %vm90_vm0, %v326_v8  ;;  %312 = vmatmul.mubr.msk.bf16.gmra.mxu1 %vm90_vm0, %v326_v8 }
  0xc6   :  { %v137_v20 = vpop.f32.mrf.mxu0  ;;  %v210_v21 = vpop.f32.mrf.mxu1 }
  0xc7   :  { %v138_v22 = vadd.f32 %v137_v20, %v408_v16  ;;  %v211_v23 = vadd.f32 %v210_v21, %v410_v17 }
  0xc8   :  { %v139_v24 = vpop.f32.mrf.mxu0  ;;  %v212_v25 = vpop.f32.mrf.mxu1 }
  0xc9   :  { %249 = vst [vmem:[#allocation2] sm:$0xff] %v138_v22  ;;  %251 = vst [vmem:[#allocation2 + $0x10] sm:$0xff] %v211_v23  ;;  %v140_v26 = vadd.f32 %v139_v24, %v412_v18  ;;  %v213_v27 = vadd.f32 %v212_v25, %v414_v19 }
  0xca   :  { %v141_v28 = vpop.f32.mrf.mxu0  ;;  %v214_v29 = vpop.f32.mrf.mxu1 }
  0xcb   :  { %250 = vst [vmem:[#allocation2 + $0x8] sm:$0xff] %v140_v26  ;;  %252 = vst [vmem:[#allocation2 + $0x18] sm:$0xff] %v213_v27  ;;  %v142_v30 = vadd.f32 %v141_v28, %v408_v16  ;;  %v215_v31 = vadd.f32 %v214_v29, %v410_v17 }
  0xcc   :  { %v143_v32 = vpop.f32.mrf.mxu0  ;;  %v216_v33 = vpop.f32.mrf.mxu1 }
  0xcd   :  { %253 = vst [vmem:[#allocation2 + $0x20] sm:$0xff] %v142_v30  ;;  %255 = vst [vmem:[#allocation2 + $0x30] sm:$0xff] %v215_v31  ;;  %v144_v34 = vadd.f32 %v143_v32, %v412_v18  ;;  %v217_v35 = vadd.f32 %v216_v33, %v414_v19 }
  0xce   :  { %v147_v36 = vpop.f32.mrf.mxu0  ;;  %v220_v37 = vpop.f32.mrf.mxu1 }
  0xcf   :  { %254 = vst [vmem:[#allocation2 + $0x28] sm:$0xff] %v144_v34  ;;  %256 = vst [vmem:[#allocation2 + $0x38] sm:$0xff] %v217_v35  ;;  %v148_v38 = vadd.f32 %v147_v36, %v408_v16  ;;  %v221_v39 = vadd.f32 %v220_v37, %v410_v17 }
  0xd0   :  { %v149_v40 = vpop.f32.mrf.mxu0  ;;  %v222_v41 = vpop.f32.mrf.mxu1 }
  0xd1   :  { %257 = vst [vmem:[#allocation2 + $0x40] sm:$0xff] %v148_v38  ;;  %259 = vst [vmem:[#allocation2 + $0x50] sm:$0xff] %v221_v39  ;;  %v150_v42 = vadd.f32 %v149_v40, %v412_v18  ;;  %v223_v43 = vadd.f32 %v222_v41, %v414_v19 }
  0xd2   :  { %v151_v44 = vpop.f32.mrf.mxu0  ;;  %v224_v45 = vpop.f32.mrf.mxu1 }
  0xd3   :  { %258 = vst [vmem:[#allocation2 + $0x48] sm:$0xff] %v150_v42  ;;  %260 = vst [vmem:[#allocation2 + $0x58] sm:$0xff] %v223_v43  ;;  %v152_v46 = vadd.f32 %v151_v44, %v408_v16  ;;  %v225_v47 = vadd.f32 %v224_v45, %v410_v17 }
  0xd4   :  { %v153_v48 = vpop.f32.mrf.mxu0  ;;  %v226_v49 = vpop.f32.mrf.mxu1 }
  0xd5   :  { %261 = vst [vmem:[#allocation2 + $0x60] sm:$0xff] %v152_v46  ;;  %263 = vst [vmem:[#allocation2 + $0x70] sm:$0xff] %v225_v47  ;;  %v154_v50 = vadd.f32 %v153_v48, %v412_v18  ;;  %v227_v51 = vadd.f32 %v226_v49, %v414_v19 }
  0xd6   :  { %v157_v52 = vpop.f32.mrf.mxu0  ;;  %v230_v53 = vpop.f32.mrf.mxu1 }
  0xd7   :  { %262 = vst [vmem:[#allocation2 + $0x68] sm:$0xff] %v154_v50  ;;  %264 = vst [vmem:[#allocation2 + $0x78] sm:$0xff] %v227_v51  ;;  %v158_v54 = vadd.f32 %v157_v52, %v408_v16  ;;  %v231_v55 = vadd.f32 %v230_v53, %v410_v17 }
  0xd8   :  { %v159_v56 = vpop.f32.mrf.mxu0  ;;  %v232_v57 = vpop.f32.mrf.mxu1 }
  0xd9   :  { %265 = vst [vmem:[#allocation2 + $0x80] sm:$0xff] %v158_v54  ;;  %267 = vst [vmem:[#allocation2 + $0x90] sm:$0xff] %v231_v55  ;;  %v160_v58 = vadd.f32 %v159_v56, %v412_v18  ;;  %v233_v59 = vadd.f32 %v232_v57, %v414_v19 }
  0xda   :  { %v161_v60 = vpop.f32.mrf.mxu0  ;;  %v234_v61 = vpop.f32.mrf.mxu1 }
  0xdb   :  { %266 = vst [vmem:[#allocation2 + $0x88] sm:$0xff] %v160_v58  ;;  %268 = vst [vmem:[#allocation2 + $0x98] sm:$0xff] %v233_v59  ;;  %v162_v62 = vadd.f32 %v161_v60, %v408_v16  ;;  %v235_v63 = vadd.f32 %v234_v61, %v410_v17 }
  0xdc   :  { %v163_v0 = vpop.f32.mrf.mxu0  ;;  %v236_v1 = vpop.f32.mrf.mxu1 }
  0xdd   :  { %269 = vst [vmem:[#allocation2 + $0xa0] sm:$0xff] %v162_v62  ;;  %271 = vst [vmem:[#allocation2 + $0xb0] sm:$0xff] %v235_v63  ;;  %v164_v2 = vadd.f32 %v163_v0, %v412_v18  ;;  %v237_v3 = vadd.f32 %v236_v1, %v414_v19 }
  0xde   :  { %v167_v4 = vpop.f32.mrf.mxu0  ;;  %v240_v5 = vpop.f32.mrf.mxu1 }
  0xdf   :  { %270 = vst [vmem:[#allocation2 + $0xa8] sm:$0xff] %v164_v2  ;;  %272 = vst [vmem:[#allocation2 + $0xb8] sm:$0xff] %v237_v3  ;;  %v168_v6 = vadd.f32 %v167_v4, %v408_v16  ;;  %v241_v7 = vadd.f32 %v240_v5, %v410_v17 }
  0xe0   :  { %v169_v8 = vpop.f32.mrf.mxu0  ;;  %v242_v9 = vpop.f32.mrf.mxu1 }
  0xe1   :  { %273 = vst [vmem:[#allocation2 + $0xc0] sm:$0xff] %v168_v6  ;;  %275 = vst [vmem:[#allocation2 + $0xd0] sm:$0xff] %v241_v7  ;;  %v170_v10 = vadd.f32 %v169_v8, %v412_v18  ;;  %v243_v11 = vadd.f32 %v242_v9, %v414_v19 }
  0xe2   :  { %v171_v12 = vpop.f32.mrf.mxu0  ;;  %v244_v13 = vpop.f32.mrf.mxu1 }
  0xe3   :  { %274 = vst [vmem:[#allocation2 + $0xc8] sm:$0xff] %v170_v10  ;;  %276 = vst [vmem:[#allocation2 + $0xd8] sm:$0xff] %v243_v11  ;;  %v172_v14 = vadd.f32 %v171_v12, %v408_v16  ;;  %v245_v15 = vadd.f32 %v244_v13, %v410_v17 }
  0xe4   :  { %v173_v20 = vpop.f32.mrf.mxu0  ;;  %v246_v21 = vpop.f32.mrf.mxu1 }
  0xe5   :  { %277 = vst [vmem:[#allocation2 + $0xe0] sm:$0xff] %v172_v14  ;;  %279 = vst [vmem:[#allocation2 + $0xf0] sm:$0xff] %v245_v15  ;;  %v174_v22 = vadd.f32 %v173_v20, %v412_v18  ;;  %v247_v23 = vadd.f32 %v246_v21, %v414_v19 }
  0xe7   :  { %278 = vst [vmem:[#allocation2 + $0xe8] sm:$0xff] %v174_v22  ;;  %280 = vst [vmem:[#allocation2 + $0xf8] sm:$0xff] %v247_v23 }
  0xe8   :  { %338 = shalt.err (!%p335_p4)
}
  0xe9   :  { %s351_s30 = smov 512   ;;  %s352_s4 = smov 32  }
  0xea   :  { %292 = dma.vmem_to_hbm [thread:$0]  %s287_s2, 4096, %s454_s3, [#allocation3], %s351_s30, %s351_s30, %s352_s4  }
  0xeb   :  { %347 = dma.done.wait [#allocation3], 4096  }
  0xec   :  { %348 = vsyncadd [#allocation3], 4294963200 }
  0xed   :  { %296 = vsyncpa [#allocation3], 1 }

</bundles_post_ra>
